<compile_context>
chip_gen: v6e
topology: v6e:2x2x1
jax: 0.10.0
libtpu: 0.0.40
codegen_flags: <defaults>
</compile_context>

<pallas_src>
import functools

import numpy as np
import jax
import jax.numpy as jnp
from jax import lax
from jax.experimental import pallas as pl
from jax.experimental.pallas import tpu as pltpu

DEFAULT_MAX_Z = 86
EPS = 1e-15
BOHR_RADIUS = 0.529177      # Angstrom
KE_KCAL = 332.0637          # Coulomb constant, kcal/mol * Angstrom / e^2


# --------------------------------------------------------------------------- #
# Kernel 1: raw atomic charge  q_raw = f @ w + z_embed[z]   (VPU lane-reduce). #
# Tiled over atoms so VMEM use is O(atom_tile * feat_dim), independent of N.   #
# --------------------------------------------------------------------------- #
def _charge_kernel(f_ref, w_ref, qz_ref, q_ref):
    # Dense(feat_dim -> 1, no bias): lane reduction instead of a K=F, N=1 matmul.
    q_ref[...] = jnp.sum(f_ref[...] * w_ref[...], axis=-1, keepdims=True) + qz_ref[...]


# --------------------------------------------------------------------------- #
# Kernel 2: pair-wise Coulomb energy, lane-dense, tiled over pairs.            #
# Inputs per pair: dx,dy,dz (12 B), q_i,q_j (8 B), mol id (4 B) = 24 B/pair.   #
# --------------------------------------------------------------------------- #
def _pair_energy_kernel(dx_ref, dy_ref, dz_ref, qi_ref, qj_ref, mid_ref, e_ref,
                        *, r_on, r_off, n_mols):
    # e_ref block (1, n_mols, 1) is resident across the pair-tile axis (accumulator).
    @pl.when(pl.program_id(1) == 0)
    def _init():
        e_ref[...] = jnp.zeros_like(e_ref)

    dx = dx_ref[...]                                       # [TR, 128]
    dy = dy_ref[...]
    dz = dz_ref[...]
    # stable norm: sum(d^2 + EPS) over the 3 components
    r2 = dx * dx + dy * dy + dz * dz + 3.0 * EPS           # [TR, 128]
    inv_r = lax.rsqrt(r2)                                  # 1/r   (one EUP op)
    r = r2 * inv_r                                         # r = r2 * rsqrt(r2)

    # switching function (get_f_switch), EUP-trimmed:
    inv_width = 1.0 / (r_off - r_on)                       # python-static
    x = (r - r_on) * inv_width
    y = 1.0 - x
    inside = jnp.logical_and(x > 0, y > 0)
    safe_den = jnp.where(inside, x * y, 1.0)
    exp_arg = jnp.clip((x - y) * pl.reciprocal(safe_den, approx=True), -60.0, 34.0)
    smooth = pl.reciprocal(1.0 + jnp.exp(exp_arg), approx=True)
    smooth = jnp.where(exp_arg >= 34.0, 0.0, smooth)
    # x <= 0 -> 1 ; y <= 0 -> 0 ; else smooth  (x<=0 & y<=0 impossible: x+y=1)
    fs = jnp.where(x <= 0, 1.0, jnp.where(y <= 0, 0.0, smooth))

    arg0 = fs * lax.rsqrt(r2 + BOHR_RADIUS * BOHR_RADIUS)
    arg1 = (1.0 - fs) * inv_r
    pw = KE_KCAL * (qi_ref[...] * qj_ref[...]) * (arg0 + arg1)       # [TR, 128]

    # pair -> molecule segment sum from the per-pair molecule-id plane.
    # Padded pairs carry id == n_mols, which matches no molecule -> exact 0.
    # TODO(synk): for very large molecule counts (M >> 64) route this reduction
    # through the MXU instead of the in-register one-hot compare.
    mid = mid_ref[...]                                               # [TR, 128] i32
    iota = lax.broadcasted_iota(jnp.int32, (n_mols,) + mid.shape, 0)  # [M, TR, 128]
    sel = jnp.where(mid[None, :, :] == iota, pw[None, :, :], 0.0)     # [M, TR, 128]
    per_row = jnp.sum(sel, axis=-1)                                   # [M, TR]
    contrib = jnp.sum(per_row, axis=-1, keepdims=True)                # [M, 1]
    e_ref[...] += contrib[None, :, :]                                 # [1, M, 1]


def electrostatics_forward(params, f, z, xyz, total_charge, num_atoms, mol_nbrs,
                           r_cut, *, tile_pairs=8192, num_chunks=1, atom_tile=256):
    """Forward pass of Electrostatics. Returns (energy [M,1], q [N,1])."""
    assert tile_pairs % 1024 == 0, "tile_pairs must be a multiple of 1024 (8x128 tiles)"
    assert atom_tile % 8 == 0
    w = params["w"]                # [feat_dim, 1]  (Dense, no bias)
    z_embed = params["z_embed"]    # [max_z, 1], row 0 = 0 (padding_idx=0)

    n_atoms, feat_dim = f.shape
    n_mols = num_atoms.shape[0]
    n_pairs = mol_nbrs.shape[0]

    # ---------------- stage 1: raw atomic charges (Pallas, tiled over atoms) ---
    w_row = w.reshape(1, feat_dim).astype(jnp.float32)
    q_z = jnp.take(z_embed, z, axis=0).astype(jnp.float32)                  # [N, 1]
    n_pad_atoms = ((n_atoms + atom_tile - 1) // atom_tile) * atom_tile
    f_pad = jnp.pad(f.astype(jnp.float32), ((0, n_pad_atoms - n_atoms), (0, 0)))
    qz_pad = jnp.pad(q_z, ((0, n_pad_atoms - n_atoms), (0, 0)))

    charge_pad = pl.pallas_call(
        _charge_kernel,
        out_shape=jax.ShapeDtypeStruct((n_pad_atoms, 1), jnp.float32),
        grid=(n_pad_atoms // atom_tile,),
        in_specs=[
            pl.BlockSpec((atom_tile, feat_dim), lambda i: (i, 0)),
            pl.BlockSpec((1, feat_dim), lambda i: (0, 0)),
            pl.BlockSpec((atom_tile, 1), lambda i: (i, 0)),
        ],
        out_specs=pl.BlockSpec((atom_tile, 1), lambda i: (i, 0)),
        compiler_params=pltpu.CompilerParams(dimension_semantics=("parallel",)),
    )(f_pad, w_row, qz_pad)
    charge = charge_pad[:n_atoms]                                           # [N, 1]

    # Per-molecule charge-conservation correction: tiny, off the hot path -> XLA.
    # (Atoms are assumed contiguous per molecule, same as the PyTorch module.)
    mol_of_atom = jnp.repeat(jnp.arange(n_mols, dtype=jnp.int32), num_atoms,
                             total_repeat_length=n_atoms)                   # [N]
    mol_sum = jax.ops.segment_sum(charge[:, 0], mol_of_atom, num_segments=n_mols)
    correction = (total_charge.astype(jnp.float32) - mol_sum) / num_atoms.astype(jnp.float32)
    q = charge + jnp.take(correction, mol_of_atom)[:, None]                 # [N, 1]

    # ---------------- stage 2: pairwise Coulomb energy (Pallas) ----------------
    tile_rows = tile_pairs // 128
    n_tiles = max(1, -(-n_pairs // tile_pairs))
    num_chunks = max(1, min(num_chunks, n_tiles))       # =1 on v5e/v6e; 2 on v7x
    tiles_per_chunk = -(-n_tiles // num_chunks)
    p_pad = num_chunks * tiles_per_chunk * tile_pairs
    p_rows = p_pad // 128
    pad = p_pad - n_pairs

    idx_i = jnp.pad(mol_nbrs[:, 0], (0, pad))           # padded pairs -> atom 0
    idx_j = jnp.pad(mol_nbrs[:, 1], (0, pad))
    # Per-pair molecule id; padded pairs get id == n_mols -> matched by no molecule.
    mid = jnp.pad(jnp.take(mol_of_atom, mol_nbrs[:, 0]), (0, pad),
                  constant_values=n_mols).astype(jnp.int32).reshape(p_rows, 128)

    xyz_f = xyz.astype(jnp.float32)

    def comp_diff(k):                                    # per-component gather,
        col = xyz_f[:, k]                                # avoids the [P,3] transpose
        return (jnp.take(col, idx_i) - jnp.take(col, idx_j)).reshape(p_rows, 128)

    dxp, dyp, dzp = comp_diff(0), comp_diff(1), comp_diff(2)
    q_flat = q[:, 0]
    q_i = jnp.take(q_flat, idx_i).reshape(p_rows, 128)
    q_j = jnp.take(q_flat, idx_j).reshape(p_rows, 128)

    r_on = r_cut / 4.0
    r_off = 3.0 * r_cut / 4.0
    kernel = functools.partial(_pair_energy_kernel, r_on=r_on, r_off=r_off,
                               n_mols=n_mols)

    tpc = tiles_per_chunk
    pair_spec = pl.BlockSpec((tile_rows, 128), lambda c, t: (c * tpc + t, 0))

    partial_e = pl.pallas_call(
        kernel,
        out_shape=jax.ShapeDtypeStruct((num_chunks, n_mols, 1), jnp.float32),
        grid=(num_chunks, tiles_per_chunk),
        in_specs=[pair_spec] * 6,                        # dx, dy, dz, q_i, q_j, mid
        out_specs=pl.BlockSpec((1, n_mols, 1), lambda c, t: (c, 0, 0)),
        compiler_params=pltpu.CompilerParams(
            dimension_semantics=("parallel", "arbitrary"),
            # ~2 MB of double-buffered blocks even at tile_pairs=32768; 48 MiB keeps
            # headroom under v7x's 64 MiB VMEM while allowing larger tiles.
            vmem_limit_bytes=48 * 1024 * 1024),
    )(dxp, dyp, dzp, q_i, q_j, mid)

    energy = jnp.sum(partial_e, axis=0)                  # [M, 1]
    return energy, q


# --------------------------------------------------------------------------- #
# Pure-JAX reference mirroring the PyTorch module (exact formulation).         #
# --------------------------------------------------------------------------- #
def _f_switch_ref(r, r_on, r_off):
    arg = (r - r_on) / (r_off - r_on)
    x = arg
    y = 1.0 - arg
    inside = jnp.logical_and(x > 0, y > 0)
    safe_den = jnp.where(inside, x * y, 1.0)
    exp_arg = (x - y) / safe_den
    smooth = 1.0 / (1.0 + jnp.exp(jnp.clip(exp_arg, -60.0, 34.0)))
    smooth = jnp.where(exp_arg >= 34.0, 0.0, smooth)
    out = jnp.where(x <= 0, 1.0, jnp.where(y <= 0, 0.0, smooth))
    return out


def reference_forward(params, f, z, xyz, total_charge, num_atoms, mol_nbrs, r_cut):
    w = params["w"]
    z_embed = params["z_embed"]
    n_mols = num_atoms.shape[0]

    charge = f @ w + z_embed[z]                                             # [N,1]
    mol_of_atom = np.repeat(np.arange(n_mols), np.asarray(num_atoms))
    mol_sum = jax.ops.segment_sum(charge[:, 0], mol_of_atom, n_mols)        # [M]
    correction = (total_charge - mol_sum) / num_atoms.astype(jnp.float32)
    q = charge + correction[mol_of_atom][:, None]                           # [N,1]

    i = mol_nbrs[:, 0]
    j = mol_nbrs[:, 1]
    diff = xyz[i] - xyz[j]
    r = jnp.sqrt(jnp.sum(diff * diff + EPS, axis=-1))
    r_on = r_cut / 4.0
    r_off = 3.0 * r_cut / 4.0
    fs = _f_switch_ref(r, r_on, r_off)
    arg0 = fs / jnp.sqrt(r * r + BOHR_RADIUS ** 2)
    arg1 = (1.0 - fs) / r
    pairwise = KE_KCAL * q[i, 0] * q[j, 0] * (arg0 + arg1)
    nbr_mol = jnp.asarray(mol_of_atom)[i]
    energy = jax.ops.segment_sum(pairwise, nbr_mol, n_mols).reshape(-1, 1)
    return energy, q


if __name__ == "__main__":
    feat_dim = 32
    max_z = DEFAULT_MAX_Z
    r_cut = 5.0

    num_atoms = jnp.array([5, 7], dtype=jnp.int32)   # 2 molecules, 12 atoms total
    n_atoms = int(np.asarray(num_atoms).sum())

    key = jax.random.PRNGKey(0)
    k1, k2, k3, k4, k5 = jax.random.split(key, 5)

    # parameters (shapes from __init__: Dense(feat_dim->1, no bias),
    # Embedding(max_z, 1, padding_idx=0))
    w = jax.random.normal(k1, (feat_dim, 1), dtype=jnp.float32) / jnp.sqrt(feat_dim)
    z_embed = 0.1 * jax.random.normal(k2, (max_z, 1), dtype=jnp.float32)
    z_embed = z_embed.at[0].set(0.0)
    params = {"w": w, "z_embed": z_embed}

    # inputs
    f = jax.random.normal(k3, (n_atoms, feat_dim), dtype=jnp.float32)
    z = jax.random.randint(k4, (n_atoms,), 1, max_z, dtype=jnp.int32)
    xyz = 2.0 * jax.random.normal(k5, (n_atoms, 3), dtype=jnp.float32)
    total_charge = jnp.array([0.0, 1.0], dtype=jnp.float32)

    # all intra-molecular pairs (i != j), like mol_nbrs in nff
    nbrs = []
    offset = 0
    for n in [5, 7]:
        for a in range(n):
            for b in range(n):
                if a != b:
                    nbrs.append((offset + a, offset + b))
        offset += n
    mol_nbrs = jnp.array(nbrs, dtype=jnp.int32)      # [62, 2]

    energy, q = electrostatics_forward(params, f, z, xyz, total_charge,
                                       num_atoms, mol_nbrs, r_cut)
    jax.block_until_ready((energy, q))

    e_ref, q_ref = reference_forward(params, f, z, xyz, total_charge,
                                     num_atoms, mol_nbrs, r_cut)
    assert energy.shape == (2, 1) and q.shape == (n_atoms, 1)
    assert jnp.allclose(q, q_ref, rtol=1e-3, atol=1e-4)
    # energy uses approx-reciprocal inside the switch function -> slightly looser atol
    assert jnp.allclose(energy, e_ref, rtol=1e-3, atol=5e-3)

    print("KERNEL_OK")
</pallas_src>

<mosaic_0001>
module attributes {stable_mosaic.version = 11 : i64} {
  func.func @_charge_kernel(%arg0: i32, %arg1: memref<256x32xf32, #tpu.memory_space<vmem>>, %arg2: memref<1x32xf32, #tpu.memory_space<vmem>>, %arg3: memref<256x1xf32, #tpu.memory_space<vmem>>, %arg4: memref<256x1xf32, #tpu.memory_space<vmem>>) attributes {dimension_semantics = [#tpu.dimension_semantics<parallel>], iteration_bounds = array<i64: 1>, scalar_prefetch = 0 : i64, scratch_operands = 0 : i64, tpu.core_type = #tpu.core_type<tc>, window_params = [{transform_indices = @transform_0, window_bounds = array<i64: 256, 32>}, {pipeline_mode = #tpu.pipeline_mode<synchronous>, transform_indices = @transform_1, window_bounds = array<i64: 1, 32>}, {transform_indices = @transform_2, window_bounds = array<i64: 256, 1>}, {transform_indices = @transform_3, window_bounds = array<i64: 256, 1>}]} {
    %c0 = arith.constant 0 : index
    %c0_0 = arith.constant 0 : index
    %0 = vector.load %arg1[%c0, %c0_0] : memref<256x32xf32, #tpu.memory_space<vmem>>, vector<256x32xf32>
    %c0_1 = arith.constant 0 : index
    %c0_2 = arith.constant 0 : index
    %1 = vector.load %arg2[%c0_1, %c0_2] : memref<1x32xf32, #tpu.memory_space<vmem>>, vector<1x32xf32>
    %2 = vector.broadcast %1 : vector<1x32xf32> to vector<256x32xf32>
    %3 = arith.mulf %0, %2 : vector<256x32xf32>
    %cst = arith.constant dense<0.000000e+00> : vector<256xf32>
    %4 = vector.multi_reduction <add>, %3, %cst [1] : vector<256x32xf32> to vector<256xf32>
    %5 = vector.shape_cast %4 : vector<256xf32> to vector<256x1xf32>
    %c0_3 = arith.constant 0 : index
    %c0_4 = arith.constant 0 : index
    %6 = vector.load %arg3[%c0_3, %c0_4] : memref<256x1xf32, #tpu.memory_space<vmem>>, vector<256x1xf32>
    %7 = arith.addf %5, %6 : vector<256x1xf32>
    %c0_5 = arith.constant 0 : index
    %c0_6 = arith.constant 0 : index
    %8 = vector.load %arg4[%c0_5, %c0_6] : memref<256x1xf32, #tpu.memory_space<vmem>>, vector<256x1xf32>
    tpu.vector_store %arg4[%c0_5, %c0_6], %7 {strides = array<i32>} : memref<256x1xf32, #tpu.memory_space<vmem>>, vector<256x1xf32>,
    return
  }
  func.func @transform_0(%arg0: i32) -> (i32, i32) {
    %c0_i32 = arith.constant 0 : i32
    %c0_i32_0 = arith.constant 0 : i32
    return %arg0, %c0_i32 : i32, i32
  }
  func.func @transform_1(%arg0: i32) -> (i32, i32) {
    %c0_i32 = arith.constant 0 : i32
    %c0_i32_0 = arith.constant 0 : i32
    %c0_i32_1 = arith.constant 0 : i32
    return %c0_i32, %c0_i32_0 : i32, i32
  }
  func.func @transform_2(%arg0: i32) -> (i32, i32) {
    %c0_i32 = arith.constant 0 : i32
    %c0_i32_0 = arith.constant 0 : i32
    return %arg0, %c0_i32 : i32, i32
  }
  func.func @transform_3(%arg0: i32) -> (i32, i32) {
    %c0_i32 = arith.constant 0 : i32
    %c0_i32_0 = arith.constant 0 : i32
    return %arg0, %c0_i32 : i32, i32
  }
}

</mosaic_0001>

<bundles_post_ra>
// kernel: tpu_custom_call.1
= control target key start
LH: loop header
LB: loop body
LE: loop exit
PB: predicated region body
PF: predicated region fallthrough
CT: control target
= control target key end

     0   :  { %vm85_vm0 = vcmask 261120   ;;  %vm246_vm1 = vcmask 7168   ;;  %s693_s0 = inlined_call_operand.vmem [shape: f32[256,32], index: 0, kind: input, shape index: {}]   ;;  %s694_s1 = inlined_call_operand.vmem [shape: f32[1,32], index: 1, kind: input, shape index: {}]   ;;  %s695_s2 = inlined_call_operand.vmem [shape: f32[256,1], index: 2, kind: input, shape index: {}]   ;;  %s696_s3 = inlined_call_operand.vmem [shape: f32[256,1], index: 3, kind: output, shape index: {}]  }
   0x1   :  { %v16_v0 = vld [vmem:[%s693_s0 + $0x10] sm:$0xff]  ;;  %v310_v1 = vld [vmem:[%s694_s1] ss:$0 sm:$0xff]  ;;  %v17_v5 = vld [vmem:[%s693_s0 + $0x18] sm:$0xff] }
   0x2   :  { %v14_v2 = vld [vmem:[%s693_s0] sm:$0xff]  ;;  %v55_v3 = vmul.f32 %v310_v1, %v16_v0  ;;  %v15_v6 = vld [vmem:[%s693_s0 + $0x8] sm:$0xff]  ;;  %v56_v7 = vmul.f32 %v310_v1, %v17_v5  ;;  %v21_v17 = vld [vmem:[%s693_s0 + $0x38] sm:$0xff] }
   0x3   :  { %v53_v4 = vmul.f32 %v310_v1, %v14_v2  ;;  %v54_v8 = vmul.f32 %v310_v1, %v15_v6  ;;  %v19_v9 = vld [vmem:[%s693_s0 + $0x28] sm:$0xff]  ;;  %v18_v10 = vld [vmem:[%s693_s0 + $0x20] sm:$0xff]  ;;  %v20_v18 = vld [vmem:[%s693_s0 + $0x30] sm:$0xff]  ;;  %v60_v21 = vmul.f32 %v310_v1, %v21_v17 }
   0x4   :  { %v92_v11 = vsel %vm85_vm0, %v55_v3, 0.0  ;;  %v95_v13 = vsel %vm85_vm0, %v56_v7, 0.0  ;;  %v58_v15 = vmul.f32 %v310_v1, %v19_v9  ;;  %v57_v16 = vmul.f32 %v310_v1, %v18_v10  ;;  %v23_v23 = vld [vmem:[%s693_s0 + $0x48] sm:$0xff]  ;;  %v22_v24 = vld [vmem:[%s693_s0 + $0x40] sm:$0xff]  ;;  %v25_v29 = vld [vmem:[%s693_s0 + $0x58] sm:$0xff] }
   0x5   :  { %v86_v12 = vsel %vm85_vm0, %v53_v4, 0.0  ;;  %93 = vadd.xlane.f32.xlu1 %v92_v11  ;;  %v89_v14 = vsel %vm85_vm0, %v54_v8, 0.0  ;;  %v59_v22 = vmul.f32 %v310_v1, %v20_v18  ;;  %v107_v25 = vsel %vm85_vm0, %v60_v21, 0.0  ;;  %v24_v30 = vld [vmem:[%s693_s0 + $0x50] sm:$0xff]  ;;  %v27_v35 = vld [vmem:[%s693_s0 + $0x68] sm:$0xff]  ;;  %v26_v36 = vld [vmem:[%s693_s0 + $0x60] sm:$0xff] }
   0x6   :  { %87 = vadd.xlane.f32.xlu0 %v86_v12  ;;  %v101_v19 = vsel %vm85_vm0, %v58_v15, 0.0  ;;  %v98_v20 = vsel %vm85_vm0, %v57_v16, 0.0  ;;  %v62_v27 = vmul.f32 %v310_v1, %v23_v23  ;;  %v61_v28 = vmul.f32 %v310_v1, %v22_v24  ;;  %v29_v41 = vld [vmem:[%s693_s0 + $0x78] sm:$0xff]  ;;  %v28_v42 = vld [vmem:[%s693_s0 + $0x70] sm:$0xff]  ;;  %v31_v47 = vld [vmem:[%s693_s0 + $0x88] sm:$0xff] }
   0x7   :  { %v104_v26 = vsel %vm85_vm0, %v59_v22, 0.0  ;;  %v64_v33 = vmul.f32 %v310_v1, %v25_v29  ;;  %v63_v34 = vmul.f32 %v310_v1, %v24_v30  ;;  %v66_v39 = vmul.f32 %v310_v1, %v27_v35  ;;  %v30_v48 = vld [vmem:[%s693_s0 + $0x80] sm:$0xff]  ;;  %v33_v53 = vld [vmem:[%s693_s0 + $0x98] sm:$0xff]  ;;  %v32_v54 = vld [vmem:[%s693_s0 + $0x90] sm:$0xff] }
   0x8   :  { %v113_v31 = vsel %vm85_vm0, %v62_v27, 0.0  ;;  %v110_v32 = vsel %vm85_vm0, %v61_v28, 0.0  ;;  %v65_v40 = vmul.f32 %v310_v1, %v26_v36  ;;  %v68_v45 = vmul.f32 %v310_v1, %v29_v41  ;;  %v35_v59 = vld [vmem:[%s693_s0 + $0xa8] sm:$0xff]  ;;  %v34_v60 = vld [vmem:[%s693_s0 + $0xa0] sm:$0xff]  ;;  %v37_v2 = vld [vmem:[%s693_s0 + $0xb8] sm:$0xff] }
   0x9   :  { %96 = vadd.xlane.f32.xlu1 %v95_v13  ;;  %v119_v37 = vsel %vm85_vm0, %v64_v33, 0.0  ;;  %v116_v38 = vsel %vm85_vm0, %v63_v34, 0.0  ;;  %v125_v43 = vsel %vm85_vm0, %v66_v39, 0.0  ;;  %v67_v46 = vmul.f32 %v310_v1, %v28_v42  ;;  %v36_v3 = vld [vmem:[%s693_s0 + $0xb0] sm:$0xff]  ;;  %v39_v8 = vld [vmem:[%s693_s0 + $0xc8] sm:$0xff]  ;;  %v38_v9 = vld [vmem:[%s693_s0 + $0xc0] sm:$0xff] }
   0xa   :  { %90 = vadd.xlane.f32.xlu0 %v89_v14  ;;  %v122_v44 = vsel %vm85_vm0, %v65_v40, 0.0  ;;  %v131_v49 = vsel %vm85_vm0, %v68_v45, 0.0  ;;  %v70_v51 = vmul.f32 %v310_v1, %v31_v47  ;;  %v69_v52 = vmul.f32 %v310_v1, %v30_v48  ;;  %v41_v14 = vld [vmem:[%s693_s0 + $0xd8] sm:$0xff]  ;;  %v40_v15 = vld [vmem:[%s693_s0 + $0xd0] sm:$0xff]  ;;  %v42_v21 = vld [vmem:[%s693_s0 + $0xe0] sm:$0xff] }
   0xb   :  { %v128_v50 = vsel %vm85_vm0, %v67_v46, 0.0  ;;  %v72_v57 = vmul.f32 %v310_v1, %v33_v53  ;;  %v71_v58 = vmul.f32 %v310_v1, %v32_v54  ;;  %v74_v63 = vmul.f32 %v310_v1, %v35_v59  ;;  %v44_v27 = vld [vmem:[%s693_s0 + $0xf0] sm:$0xff]  ;;  %v182_v35 = vld [vmem:[%s695_s2] sm:$0xff]  ;;  %v185_v39 = vld [vmem:[%s695_s2 + $0x18] sm:$0xff] }
   0xc   :  { %v137_v55 = vsel %vm85_vm0, %v70_v51, 0.0  ;;  %v134_v56 = vsel %vm85_vm0, %v69_v52, 0.0  ;;  %v73_v0 = vmul.f32 %v310_v1, %v34_v60  ;;  %v76_v6 = vmul.f32 %v310_v1, %v37_v2  ;;  %v184_v34 = vld [vmem:[%s695_s2 + $0x10] sm:$0xff]  ;;  %v183_v40 = vld [vmem:[%s695_s2 + $0x8] sm:$0xff]  ;;  %v186_v46 = vld [vmem:[%s695_s2 + $0x20] sm:$0xff] }
   0xd   :  { %102 = vadd.xlane.f32.xlu1 %v101_v19  ;;  %v143_v61 = vsel %vm85_vm0, %v72_v57, 0.0  ;;  %v140_v62 = vsel %vm85_vm0, %v71_v58, 0.0  ;;  %v149_v4 = vsel %vm85_vm0, %v74_v63, 0.0  ;;  %v75_v7 = vmul.f32 %v310_v1, %v36_v3  ;;  %v187_v45 = vld [vmem:[%s695_s2 + $0x28] sm:$0xff]  ;;  %v189_v51 = vld [vmem:[%s695_s2 + $0x38] sm:$0xff]  ;;  %v188_v52 = vld [vmem:[%s695_s2 + $0x30] sm:$0xff] }
   0xe   :  { %99 = vadd.xlane.f32.xlu0 %v98_v20  ;;  %v146_v5 = vsel %vm85_vm0, %v73_v0, 0.0  ;;  %v155_v10 = vsel %vm85_vm0, %v76_v6, 0.0  ;;  %v78_v12 = vmul.f32 %v310_v1, %v39_v8  ;;  %v77_v13 = vmul.f32 %v310_v1, %v38_v9  ;;  %v43_v20 = vld [vmem:[%s693_s0 + $0xe8] sm:$0xff]  ;;  %v190_v58 = vld [vmem:[%s695_s2 + $0x40] sm:$0xff]  ;;  %v193_v63 = vld [vmem:[%s695_s2 + $0x58] sm:$0xff] }
   0xf   :  { %v152_v11 = vsel %vm85_vm0, %v75_v7, 0.0  ;;  %v80_v18 = vmul.f32 %v310_v1, %v41_v14  ;;  %v79_v19 = vmul.f32 %v310_v1, %v40_v15  ;;  %v82_v24 = vmul.f32 %v310_v1, %v43_v20  ;;  %v191_v57 = vld [vmem:[%s695_s2 + $0x48] sm:$0xff]  ;;  %v192_v0 = vld [vmem:[%s695_s2 + $0x50] sm:$0xff]  ;;  %v194_v7 = vld [vmem:[%s695_s2 + $0x60] sm:$0xff] }
  0x10   :  { %v161_v16 = vsel %vm85_vm0, %v78_v12, 0.0  ;;  %v158_v17 = vsel %vm85_vm0, %v77_v13, 0.0  ;;  %v195_v6 = vld [vmem:[%s695_s2 + $0x68] sm:$0xff]  ;;  %v197_v12 = vld [vmem:[%s695_s2 + $0x78] sm:$0xff]  ;;  %v196_v13 = vld [vmem:[%s695_s2 + $0x70] sm:$0xff] }
  0x11   :  { %108 = vadd.xlane.f32.xlu1 %v107_v25  ;;  %v167_v22 = vsel %vm85_vm0, %v80_v18, 0.0  ;;  %v164_v23 = vsel %vm85_vm0, %v79_v19, 0.0  ;;  %v81_v25 = vmul.f32 %v310_v1, %v42_v21  ;;  %v173_v28 = vsel %vm85_vm0, %v82_v24, 0.0  ;;  %v199_v18 = vld [vmem:[%s695_s2 + $0x88] sm:$0xff]  ;;  %v198_v19 = vld [vmem:[%s695_s2 + $0x80] sm:$0xff]  ;;  %v201_v24 = vld [vmem:[%s695_s2 + $0x98] sm:$0xff] }
  0x12   :  { %105 = vadd.xlane.f32.xlu0 %v104_v26  ;;  %v45_v26 = vld [vmem:[%s693_s0 + $0xf8] sm:$0xff] }
  0x13   :  { %v170_v29 = vsel %vm85_vm0, %v81_v25, 0.0  ;;  %v84_v30 = vmul.f32 %v310_v1, %v45_v26  ;;  %v200_v25 = vld [vmem:[%s695_s2 + $0x90] sm:$0xff] }
  0x15   :  { %114 = vadd.xlane.f32.xlu1 %v113_v31  ;;  %v83_v31 = vmul.f32 %v310_v1, %v44_v27 }
  0x16   :  { %111 = vadd.xlane.f32.xlu0 %v110_v32  ;;  %v179_v32 = vsel %vm85_vm0, %v84_v30, 0.0  ;;  %v203_v30 = vld [vmem:[%s695_s2 + $0xa8] sm:$0xff] }
  0x17   :  { %v176_v33 = vsel %vm85_vm0, %v83_v31, 0.0  ;;  %v202_v31 = vld [vmem:[%s695_s2 + $0xa0] sm:$0xff] }
  0x19   :  { %120 = vadd.xlane.f32.xlu1 %v119_v37 }
  0x1a   :  { %117 = vadd.xlane.f32.xlu0 %v116_v38 }
  0x1d   :  { %126 = vadd.xlane.f32.xlu1 %v125_v43 }
  0x1e   :  { %123 = vadd.xlane.f32.xlu0 %v122_v44 }
  0x21   :  { %132 = vadd.xlane.f32.xlu1 %v131_v49 }
  0x22   :  { %129 = vadd.xlane.f32.xlu0 %v128_v50 }
  0x25   :  { %138 = vadd.xlane.f32.xlu1 %v137_v55 }
  0x26   :  { %135 = vadd.xlane.f32.xlu0 %v134_v56 }
  0x29   :  { %144 = vadd.xlane.f32.xlu1 %v143_v61 }
  0x2a   :  { %141 = vadd.xlane.f32.xlu0 %v140_v62 }
  0x2d   :  { %150 = vadd.xlane.f32.xlu1 %v149_v4 }
  0x2e   :  { %147 = vadd.xlane.f32.xlu0 %v146_v5 }
  0x31   :  { %156 = vadd.xlane.f32.xlu1 %v155_v10 }
  0x32   :  { %153 = vadd.xlane.f32.xlu0 %v152_v11 }
  0x35   :  { %162 = vadd.xlane.f32.xlu1 %v161_v16 }
  0x36   :  { %159 = vadd.xlane.f32.xlu0 %v158_v17 }
  0x39   :  { %168 = vadd.xlane.f32.xlu1 %v167_v22 }
  0x3a   :  { %165 = vadd.xlane.f32.xlu0 %v164_v23 }
  0x3d   :  { %174 = vadd.xlane.f32.xlu1 %v173_v28 }
  0x3e   :  { %171 = vadd.xlane.f32.xlu0 %v170_v29 }
  0x41   :  { %180 = vadd.xlane.f32.xlu1 %v179_v32 }
  0x42   :  { %177 = vadd.xlane.f32.xlu0 %v176_v33 }
  0x8e   :  { %v94_v36 = vpop.xlane.xlu1 %93 }
  0x8f   :  { %v88_v37 = vpop.xlane.xlu0 %87  ;;  %v216_v1 = vadd.f32 %v184_v34, %v94_v36  ;;  %v205_v36 = vld [vmem:[%s695_s2 + $0xb8] sm:$0xff] }
  0x90   :  { %v214_v38 = vadd.f32 %v182_v35, %v88_v37  ;;  %v204_v37 = vld [vmem:[%s695_s2 + $0xb0] sm:$0xff] }
  0x91   :  { %249 = vst.msk [vmem:[%s696_s3 + $0x10] sm:$0xff] %vm246_vm1, %v216_v1 }
  0x92   :  { %247 = vst.msk [vmem:[%s696_s3] sm:$0xff] %vm246_vm1, %v214_v38  ;;  %v97_v41 = vpop.xlane.xlu1 %96 }
  0x93   :  { %v91_v42 = vpop.xlane.xlu0 %90  ;;  %v217_v43 = vadd.f32 %v185_v39, %v97_v41  ;;  %v207_v41 = vld [vmem:[%s695_s2 + $0xc8] sm:$0xff] }
  0x94   :  { %v215_v44 = vadd.f32 %v183_v40, %v91_v42  ;;  %v206_v42 = vld [vmem:[%s695_s2 + $0xc0] sm:$0xff] }
  0x95   :  { %250 = vst.msk [vmem:[%s696_s3 + $0x18] sm:$0xff] %vm246_vm1, %v217_v43 }
  0x96   :  { %248 = vst.msk [vmem:[%s696_s3 + $0x8] sm:$0xff] %vm246_vm1, %v215_v44  ;;  %v103_v47 = vpop.xlane.xlu1 %102 }
  0x97   :  { %v100_v48 = vpop.xlane.xlu0 %99  ;;  %v219_v49 = vadd.f32 %v187_v45, %v103_v47  ;;  %v209_v47 = vld [vmem:[%s695_s2 + $0xd8] sm:$0xff] }
  0x98   :  { %v218_v50 = vadd.f32 %v186_v46, %v100_v48  ;;  %v208_v48 = vld [vmem:[%s695_s2 + $0xd0] sm:$0xff] }
  0x99   :  { %252 = vst.msk [vmem:[%s696_s3 + $0x28] sm:$0xff] %vm246_vm1, %v219_v49 }
  0x9a   :  { %251 = vst.msk [vmem:[%s696_s3 + $0x20] sm:$0xff] %vm246_vm1, %v218_v50  ;;  %v109_v53 = vpop.xlane.xlu1 %108 }
  0x9b   :  { %v106_v54 = vpop.xlane.xlu0 %105  ;;  %v221_v55 = vadd.f32 %v189_v51, %v109_v53  ;;  %v211_v53 = vld [vmem:[%s695_s2 + $0xe8] sm:$0xff] }
  0x9c   :  { %v220_v56 = vadd.f32 %v188_v52, %v106_v54  ;;  %v210_v54 = vld [vmem:[%s695_s2 + $0xe0] sm:$0xff] }
  0x9d   :  { %254 = vst.msk [vmem:[%s696_s3 + $0x38] sm:$0xff] %vm246_vm1, %v221_v55 }
  0x9e   :  { %253 = vst.msk [vmem:[%s696_s3 + $0x30] sm:$0xff] %vm246_vm1, %v220_v56  ;;  %v115_v59 = vpop.xlane.xlu1 %114 }
  0x9f   :  { %v112_v60 = vpop.xlane.xlu0 %111  ;;  %v223_v61 = vadd.f32 %v191_v57, %v115_v59  ;;  %v213_v59 = vld [vmem:[%s695_s2 + $0xf8] sm:$0xff] }
  0xa0   :  { %v222_v62 = vadd.f32 %v190_v58, %v112_v60  ;;  %v212_v60 = vld [vmem:[%s695_s2 + $0xf0] sm:$0xff] }
  0xa1   :  { %256 = vst.msk [vmem:[%s696_s3 + $0x48] sm:$0xff] %vm246_vm1, %v223_v61 }
  0xa2   :  { %255 = vst.msk [vmem:[%s696_s3 + $0x40] sm:$0xff] %vm246_vm1, %v222_v62  ;;  %v121_v2 = vpop.xlane.xlu1 %120 }
  0xa3   :  { %v118_v3 = vpop.xlane.xlu0 %117  ;;  %v225_v4 = vadd.f32 %v193_v63, %v121_v2 }
  0xa4   :  { %v224_v5 = vadd.f32 %v192_v0, %v118_v3 }
  0xa5   :  { %258 = vst.msk [vmem:[%s696_s3 + $0x58] sm:$0xff] %vm246_vm1, %v225_v4 }
  0xa6   :  { %257 = vst.msk [vmem:[%s696_s3 + $0x50] sm:$0xff] %vm246_vm1, %v224_v5  ;;  %v127_v8 = vpop.xlane.xlu1 %126 }
  0xa7   :  { %v124_v9 = vpop.xlane.xlu0 %123  ;;  %v227_v10 = vadd.f32 %v195_v6, %v127_v8 }
  0xa8   :  { %v226_v11 = vadd.f32 %v194_v7, %v124_v9 }
  0xa9   :  { %260 = vst.msk [vmem:[%s696_s3 + $0x68] sm:$0xff] %vm246_vm1, %v227_v10 }
  0xaa   :  { %259 = vst.msk [vmem:[%s696_s3 + $0x60] sm:$0xff] %vm246_vm1, %v226_v11  ;;  %v133_v14 = vpop.xlane.xlu1 %132 }
  0xab   :  { %v130_v15 = vpop.xlane.xlu0 %129  ;;  %v229_v16 = vadd.f32 %v197_v12, %v133_v14 }
  0xac   :  { %v228_v17 = vadd.f32 %v196_v13, %v130_v15 }
  0xad   :  { %262 = vst.msk [vmem:[%s696_s3 + $0x78] sm:$0xff] %vm246_vm1, %v229_v16 }
  0xae   :  { %261 = vst.msk [vmem:[%s696_s3 + $0x70] sm:$0xff] %vm246_vm1, %v228_v17  ;;  %v139_v20 = vpop.xlane.xlu1 %138 }
  0xaf   :  { %v136_v21 = vpop.xlane.xlu0 %135  ;;  %v231_v22 = vadd.f32 %v199_v18, %v139_v20 }
  0xb0   :  { %v230_v23 = vadd.f32 %v198_v19, %v136_v21 }
  0xb1   :  { %264 = vst.msk [vmem:[%s696_s3 + $0x88] sm:$0xff] %vm246_vm1, %v231_v22 }
  0xb2   :  { %263 = vst.msk [vmem:[%s696_s3 + $0x80] sm:$0xff] %vm246_vm1, %v230_v23  ;;  %v145_v26 = vpop.xlane.xlu1 %144 }
  0xb3   :  { %v142_v27 = vpop.xlane.xlu0 %141  ;;  %v233_v28 = vadd.f32 %v201_v24, %v145_v26 }
  0xb4   :  { %v232_v29 = vadd.f32 %v200_v25, %v142_v27 }
  0xb5   :  { %266 = vst.msk [vmem:[%s696_s3 + $0x98] sm:$0xff] %vm246_vm1, %v233_v28 }
  0xb6   :  { %265 = vst.msk [vmem:[%s696_s3 + $0x90] sm:$0xff] %vm246_vm1, %v232_v29  ;;  %v151_v32 = vpop.xlane.xlu1 %150 }
  0xb7   :  { %v148_v33 = vpop.xlane.xlu0 %147  ;;  %v235_v34 = vadd.f32 %v203_v30, %v151_v32 }
  0xb8   :  { %v234_v35 = vadd.f32 %v202_v31, %v148_v33 }
  0xb9   :  { %268 = vst.msk [vmem:[%s696_s3 + $0xa8] sm:$0xff] %vm246_vm1, %v235_v34 }
  0xba   :  { %267 = vst.msk [vmem:[%s696_s3 + $0xa0] sm:$0xff] %vm246_vm1, %v234_v35  ;;  %v157_v1 = vpop.xlane.xlu1 %156 }
  0xbb   :  { %v154_v38 = vpop.xlane.xlu0 %153  ;;  %v237_v39 = vadd.f32 %v205_v36, %v157_v1 }
  0xbc   :  { %v236_v40 = vadd.f32 %v204_v37, %v154_v38 }
  0xbd   :  { %270 = vst.msk [vmem:[%s696_s3 + $0xb8] sm:$0xff] %vm246_vm1, %v237_v39 }
  0xbe   :  { %269 = vst.msk [vmem:[%s696_s3 + $0xb0] sm:$0xff] %vm246_vm1, %v236_v40  ;;  %v163_v43 = vpop.xlane.xlu1 %162 }
  0xbf   :  { %v160_v44 = vpop.xlane.xlu0 %159  ;;  %v239_v45 = vadd.f32 %v207_v41, %v163_v43 }
  0xc0   :  { %v238_v46 = vadd.f32 %v206_v42, %v160_v44 }
  0xc1   :  { %272 = vst.msk [vmem:[%s696_s3 + $0xc8] sm:$0xff] %vm246_vm1, %v239_v45 }
  0xc2   :  { %271 = vst.msk [vmem:[%s696_s3 + $0xc0] sm:$0xff] %vm246_vm1, %v238_v46  ;;  %v169_v49 = vpop.xlane.xlu1 %168 }
  0xc3   :  { %v166_v50 = vpop.xlane.xlu0 %165  ;;  %v241_v51 = vadd.f32 %v209_v47, %v169_v49 }
  0xc4   :  { %v240_v52 = vadd.f32 %v208_v48, %v166_v50 }
  0xc5   :  { %274 = vst.msk [vmem:[%s696_s3 + $0xd8] sm:$0xff] %vm246_vm1, %v241_v51 }
  0xc6   :  { %273 = vst.msk [vmem:[%s696_s3 + $0xd0] sm:$0xff] %vm246_vm1, %v240_v52  ;;  %v175_v55 = vpop.xlane.xlu1 %174 }
  0xc7   :  { %v172_v56 = vpop.xlane.xlu0 %171  ;;  %v243_v57 = vadd.f32 %v211_v53, %v175_v55 }
  0xc8   :  { %v242_v58 = vadd.f32 %v210_v54, %v172_v56 }
  0xc9   :  { %276 = vst.msk [vmem:[%s696_s3 + $0xe8] sm:$0xff] %vm246_vm1, %v243_v57 }
  0xca   :  { %275 = vst.msk [vmem:[%s696_s3 + $0xe0] sm:$0xff] %vm246_vm1, %v242_v58  ;;  %v181_v61 = vpop.xlane.xlu1 %180 }
  0xcb   :  { %v178_v62 = vpop.xlane.xlu0 %177  ;;  %v245_v63 = vadd.f32 %v213_v59, %v181_v61 }
  0xcc   :  { %v244_v0 = vadd.f32 %v212_v60, %v178_v62 }
  0xcd   :  { %278 = vst.msk [vmem:[%s696_s3 + $0xf8] sm:$0xff] %vm246_vm1, %v245_v63 }
  0xce   :  { %277 = vst.msk [vmem:[%s696_s3 + $0xf0] sm:$0xff] %vm246_vm1, %v244_v0 }

</bundles_post_ra>
